<compile_context>
chip_gen: v5e
topology: v5e:2x2
jax: 0.10.0
libtpu: 0.0.40
codegen_flags: <defaults>
</compile_context>

<pallas_src>
import functools

import jax
import jax.numpy as jnp
from jax.experimental import pallas as pl
from jax.experimental.pallas import tpu as pltpu

HIDDEN = 64


def _round_up(n, m):
    return ((n + m - 1) // m) * m


def actor_kernel(x_ref, w1_ref, b1_ref, w2_ref, b2_ref, wh_ref, bh_ref,
                 out_ref, *, action_dim):
    w1 = w1_ref[...]
    w2 = w2_ref[...]
    wh = wh_ref[...]
    cdt = w1.dtype  # compute dtype fed to the MXU (f32 or bf16); accum is f32

    # shared_net: Linear -> ReLU -> Linear -> ReLU
    x = x_ref[...].astype(cdt)
    h = jnp.dot(x, w1, preferred_element_type=jnp.float32) + b1_ref[...].astype(jnp.float32)
    h = jnp.maximum(h, 0.0)
    h = jnp.dot(h.astype(cdt), w2, preferred_element_type=jnp.float32) + b2_ref[...].astype(jnp.float32)
    h = jnp.maximum(h, 0.0)

    # Fused mu|sigma head: one MXU dot producing a lane-padded [TB, pad_out] block.
    z = jnp.dot(h.astype(cdt), wh, preferred_element_type=jnp.float32) + bh_ref[...].astype(jnp.float32)

    col = jax.lax.broadcasted_iota(jnp.int32, z.shape, dimension=1)
    mu = jnp.tanh(z)
    # Numerically stable softplus + 1e-4 (columns [A, 2A); padding cols are sliced off).
    sg = jnp.maximum(z, 0.0) + jnp.log1p(jnp.exp(-jnp.abs(z))) + 1e-4
    out_ref[...] = jnp.where(col < action_dim, mu, sg)


@functools.partial(jax.jit, static_argnames=("tile_batch",))
def actor_forward(x, params, *, tile_batch=256):
    """x: [B, feature_dim]. Returns (mu, sigma), each [B, action_dim] float32."""
    B, F = x.shape
    H = params["w1"].shape[1]
    A = params["wmu"].shape[1]
    pdt = params["w1"].dtype

    b1 = params["b1"].reshape(1, H)
    b2 = params["b2"].reshape(1, H)

    # Fuse the two heads and lane-pad the combined width to a multiple of 128 so the
    # output block stores are unmasked / lane-dense. cols [0:A]=mu, [A:2A]=sigma.
    pad_out = _round_up(2 * A, 128)
    wh = jnp.zeros((H, pad_out), pdt)
    wh = wh.at[:, :A].set(params["wmu"].astype(pdt))
    wh = wh.at[:, A:2 * A].set(params["wsg"].astype(pdt))
    bh = jnp.zeros((1, pad_out), pdt)
    bh = bh.at[:, :A].set(params["bmu"].reshape(1, A).astype(pdt))
    bh = bh.at[:, A:2 * A].set(params["bsg"].reshape(1, A).astype(pdt))

    # Batch-tiled grid: x / out pipelined over batch tiles, weights VMEM-resident.
    tb = _round_up(min(tile_batch, _round_up(B, 8)), 8)
    b_pad = _round_up(B, tb)
    x_p = x if b_pad == B else jnp.pad(x, ((0, b_pad - B), (0, 0)))
    grid = (b_pad // tb,)

    w_itemsize = jnp.dtype(pdt).itemsize
    cost = pl.CostEstimate(
        flops=2 * b_pad * (F * H + H * H + H * pad_out),
        transcendentals=3 * b_pad * pad_out,
        bytes_accessed=(x_p.size * jnp.dtype(x_p.dtype).itemsize
                        + (F * H + H + H * H + H + H * pad_out + pad_out) * w_itemsize
                        + b_pad * pad_out * 4),
    )

    out = pl.pallas_call(
        functools.partial(actor_kernel, action_dim=A),
        out_shape=jax.ShapeDtypeStruct((b_pad, pad_out), jnp.float32),
        grid=grid,
        in_specs=[
            pl.BlockSpec((tb, F), lambda i: (i, 0)),        # x: tiled on batch
            pl.BlockSpec((F, H), lambda i: (0, 0)),         # w1 (resident)
            pl.BlockSpec((1, H), lambda i: (0, 0)),         # b1
            pl.BlockSpec((H, H), lambda i: (0, 0)),         # w2
            pl.BlockSpec((1, H), lambda i: (0, 0)),         # b2
            pl.BlockSpec((H, pad_out), lambda i: (0, 0)),   # fused mu|sigma weight
            pl.BlockSpec((1, pad_out), lambda i: (0, 0)),   # fused mu|sigma bias
        ],
        out_specs=pl.BlockSpec((tb, pad_out), lambda i: (i, 0)),
        compiler_params=pltpu.CompilerParams(
            dimension_semantics=("parallel",),              # shard batch tiles across TCs (v7x)
        ),
        cost_estimate=cost,
    )(x_p, params["w1"], b1, params["w2"], b2, wh, bh)

    mu = out[:B, :A]
    sigma = out[:B, A:2 * A]
    return mu, sigma


def ref_forward(x, params):
    """Pure-JAX reference mirroring the kernel math (same dtype handling)."""
    cdt = params["w1"].dtype
    f32 = jnp.float32
    h = jnp.dot(x.astype(cdt), params["w1"], preferred_element_type=f32) + params["b1"].astype(f32)
    h = jnp.maximum(h, 0.0)
    h = jnp.dot(h.astype(cdt), params["w2"], preferred_element_type=f32) + params["b2"].astype(f32)
    h = jnp.maximum(h, 0.0)
    zmu = jnp.dot(h.astype(cdt), params["wmu"], preferred_element_type=f32) + params["bmu"].astype(f32)
    zsg = jnp.dot(h.astype(cdt), params["wsg"], preferred_element_type=f32) + params["bsg"].astype(f32)
    mu = jnp.tanh(zmu)
    sigma = jnp.maximum(zsg, 0.0) + jnp.log1p(jnp.exp(-jnp.abs(zsg))) + 1e-4
    return mu, sigma


def init_params(key, feature_dim, action_dim):
    """Mirror the PyTorch __init__ (Linear default init; mu.weight ~ U(-0.003, 0.003);
    sigma.bias = -1). Weights stored as [in, out]; biases as [1, out]."""
    ks = jax.random.split(key, 8)

    def lin(kw, kb, fan_in, fan_out):
        bound = 1.0 / jnp.sqrt(float(fan_in))
        w = jax.random.uniform(kw, (fan_in, fan_out), jnp.float32, -bound, bound)
        b = jax.random.uniform(kb, (1, fan_out), jnp.float32, -bound, bound)
        return w, b

    w1, b1 = lin(ks[0], ks[1], feature_dim, HIDDEN)
    w2, b2 = lin(ks[2], ks[3], HIDDEN, HIDDEN)

    hb = 1.0 / jnp.sqrt(float(HIDDEN))
    wmu = jax.random.uniform(ks[4], (HIDDEN, action_dim), jnp.float32, -0.003, 0.003)
    bmu = jax.random.uniform(ks[5], (1, action_dim), jnp.float32, -hb, hb)
    wsg = jax.random.uniform(ks[6], (HIDDEN, action_dim), jnp.float32, -hb, hb)
    bsg = jnp.full((1, action_dim), -1.0, jnp.float32)

    return dict(w1=w1, b1=b1, w2=w2, b2=b2, wmu=wmu, bmu=bmu, wsg=wsg, bsg=bsg)


if __name__ == "__main__":
    key = jax.random.PRNGKey(0)
    k_x, k_p, k_x2 = jax.random.split(key, 3)

    feature_dim, action_dim = 32, 4
    params = init_params(k_p, feature_dim, action_dim)

    # --- Run 1: small batch, f32 params (exact semantics vs reference) -------
    batch = 8
    x = jax.random.normal(k_x, (batch, feature_dim), jnp.float32)
    mu, sigma = actor_forward(x, params)
    jax.block_until_ready((mu, sigma))

    assert mu.shape == (batch, action_dim) and sigma.shape == (batch, action_dim)
    assert mu.dtype == jnp.float32 and sigma.dtype == jnp.float32
    assert bool(jnp.all(sigma > 0.0))
    assert bool(jnp.all(jnp.abs(mu) <= 1.0))

    mu_r, sg_r = ref_forward(x, params)
    assert bool(jnp.allclose(mu, mu_r, atol=1e-5, rtol=1e-5))
    assert bool(jnp.allclose(sigma, sg_r, atol=1e-5, rtol=1e-5))

    # --- Run 2: larger batch, bf16 params, multi-tile grid + batch padding ---
    batch2 = 500  # pads to 512 -> 2 batch tiles of 256
    x2 = jax.random.normal(k_x2, (batch2, feature_dim), jnp.float32)
    params_bf16 = jax.tree.map(lambda p: p.astype(jnp.bfloat16), params)
    mu2, sg2 = actor_forward(x2, params_bf16)
    jax.block_until_ready((mu2, sg2))

    assert mu2.shape == (batch2, action_dim) and sg2.shape == (batch2, action_dim)
    assert bool(jnp.all(sg2 > 0.0))
    assert bool(jnp.all(jnp.abs(mu2) <= 1.0))

    mu2_r, sg2_r = ref_forward(x2, params_bf16)
    assert bool(jnp.allclose(mu2, mu2_r, atol=2e-3, rtol=2e-3))
    assert bool(jnp.allclose(sg2, sg2_r, atol=2e-3, rtol=2e-3))

    print("KERNEL_OK")
</pallas_src>

<mosaic_0001>
module attributes {stable_mosaic.version = 11 : i64} {
  func.func @actor_kernel(%arg0: i32, %arg1: memref<8x32xf32, #tpu.memory_space<vmem>>, %arg2: memref<32x64xf32, #tpu.memory_space<vmem>>, %arg3: memref<1x64xf32, #tpu.memory_space<vmem>>, %arg4: memref<64x64xf32, #tpu.memory_space<vmem>>, %arg5: memref<1x64xf32, #tpu.memory_space<vmem>>, %arg6: memref<64x128xf32, #tpu.memory_space<vmem>>, %arg7: memref<1x128xf32, #tpu.memory_space<vmem>>, %arg8: memref<8x128xf32, #tpu.memory_space<vmem>>) attributes {dimension_semantics = [#tpu.dimension_semantics<parallel>], iteration_bounds = array<i64: 1>, scalar_prefetch = 0 : i64, scratch_operands = 0 : i64, tpu.core_type = #tpu.core_type<tc>, window_params = [{transform_indices = @transform_0, window_bounds = array<i64: 8, 32>}, {pipeline_mode = #tpu.pipeline_mode<synchronous>, transform_indices = @transform_1, window_bounds = array<i64: 32, 64>}, {pipeline_mode = #tpu.pipeline_mode<synchronous>, transform_indices = @transform_2, window_bounds = array<i64: 1, 64>}, {pipeline_mode = #tpu.pipeline_mode<synchronous>, transform_indices = @transform_3, window_bounds = array<i64: 64, 64>}, {pipeline_mode = #tpu.pipeline_mode<synchronous>, transform_indices = @transform_4, window_bounds = array<i64: 1, 64>}, {pipeline_mode = #tpu.pipeline_mode<synchronous>, transform_indices = @transform_5, window_bounds = array<i64: 64, 128>}, {pipeline_mode = #tpu.pipeline_mode<synchronous>, transform_indices = @transform_6, window_bounds = array<i64: 1, 128>}, {transform_indices = @transform_7, window_bounds = array<i64: 8, 128>}]} {
    %c0 = arith.constant 0 : index
    %c0_0 = arith.constant 0 : index
    %0 = vector.load %arg2[%c0, %c0_0] : memref<32x64xf32, #tpu.memory_space<vmem>>, vector<32x64xf32>
    %c0_1 = arith.constant 0 : index
    %c0_2 = arith.constant 0 : index
    %1 = vector.load %arg4[%c0_1, %c0_2] : memref<64x64xf32, #tpu.memory_space<vmem>>, vector<64x64xf32>
    %c0_3 = arith.constant 0 : index
    %c0_4 = arith.constant 0 : index
    %2 = vector.load %arg6[%c0_3, %c0_4] : memref<64x128xf32, #tpu.memory_space<vmem>>, vector<64x128xf32>
    %c0_5 = arith.constant 0 : index
    %c0_6 = arith.constant 0 : index
    %3 = vector.load %arg1[%c0_5, %c0_6] : memref<8x32xf32, #tpu.memory_space<vmem>>, vector<8x32xf32>
    %cst = arith.constant dense<0.000000e+00> : vector<8x64xf32>
    %4 = tpu.matmul %3, %0, %cst {dimension_numbers = #tpu.dot_dimension_numbers<[1], [0], [0], [1], [0, 0, 1, 1], [], []>} : vector<8x32xf32>, vector<32x64xf32>, vector<8x64xf32> -> vector<8x64xf32>
    %c0_7 = arith.constant 0 : index
    %c0_8 = arith.constant 0 : index
    %5 = vector.load %arg3[%c0_7, %c0_8] : memref<1x64xf32, #tpu.memory_space<vmem>>, vector<1x64xf32>
    %6 = vector.broadcast %5 : vector<1x64xf32> to vector<8x64xf32>
    %7 = arith.addf %4, %6 : vector<8x64xf32>
    %cst_9 = arith.constant 0.000000e+00 : f32
    %8 = vector.broadcast %cst_9 : f32 to vector<8x64xf32>
    %9 = arith.maximumf %7, %8 : vector<8x64xf32>
    %cst_10 = arith.constant dense<0.000000e+00> : vector<8x64xf32>
    %10 = tpu.matmul %9, %1, %cst_10 {dimension_numbers = #tpu.dot_dimension_numbers<[1], [0], [0], [1], [0, 0, 1, 1], [], []>} : vector<8x64xf32>, vector<64x64xf32>, vector<8x64xf32> -> vector<8x64xf32>
    %c0_11 = arith.constant 0 : index
    %c0_12 = arith.constant 0 : index
    %11 = vector.load %arg5[%c0_11, %c0_12] : memref<1x64xf32, #tpu.memory_space<vmem>>, vector<1x64xf32>
    %12 = vector.broadcast %11 : vector<1x64xf32> to vector<8x64xf32>
    %13 = arith.addf %10, %12 : vector<8x64xf32>
    %cst_13 = arith.constant 0.000000e+00 : f32
    %14 = vector.broadcast %cst_13 : f32 to vector<8x64xf32>
    %15 = arith.maximumf %13, %14 : vector<8x64xf32>
    %cst_14 = arith.constant dense<0.000000e+00> : vector<8x128xf32>
    %16 = tpu.matmul %15, %2, %cst_14 {dimension_numbers = #tpu.dot_dimension_numbers<[1], [0], [0], [1], [0, 0, 1, 1], [], []>} : vector<8x64xf32>, vector<64x128xf32>, vector<8x128xf32> -> vector<8x128xf32>
    %c0_15 = arith.constant 0 : index
    %c0_16 = arith.constant 0 : index
    %17 = vector.load %arg7[%c0_15, %c0_16] : memref<1x128xf32, #tpu.memory_space<vmem>>, vector<1x128xf32>
    %18 = vector.broadcast %17 : vector<1x128xf32> to vector<8x128xf32>
    %19 = arith.addf %16, %18 : vector<8x128xf32>
    %20 = tpu.iota {dimensions = array<i32: 1>} : vector<8x128xi32>
    %21 = math.tanh %19 : vector<8x128xf32>
    %cst_17 = arith.constant 0.000000e+00 : f32
    %22 = vector.broadcast %cst_17 : f32 to vector<8x128xf32>
    %23 = arith.maximumf %19, %22 : vector<8x128xf32>
    %24 = math.absf %19 : vector<8x128xf32>
    %cst_18 = arith.constant 0.000000e+00 : f32
    %25 = vector.broadcast %cst_18 : f32 to vector<8x128xf32>
    %26 = arith.subf %25, %24 : vector<8x128xf32>
    %27 = math.exp %26 : vector<8x128xf32>
    %28 = math.log1p %27 : vector<8x128xf32>
    %29 = arith.addf %23, %28 : vector<8x128xf32>
    %cst_19 = arith.constant 9.99999974E-5 : f32
    %30 = vector.broadcast %cst_19 : f32 to vector<8x128xf32>
    %31 = arith.addf %29, %30 : vector<8x128xf32>
    %c4_i32 = arith.constant 4 : i32
    %32 = vector.broadcast %c4_i32 : i32 to vector<8x128xi32>
    %33 = arith.cmpi slt, %20, %32 : vector<8x128xi32>
    %34 = arith.select %33, %21, %31 : vector<8x128xi1>, vector<8x128xf32>
    %c0_20 = arith.constant 0 : index
    %c0_21 = arith.constant 0 : index
    %35 = vector.load %arg8[%c0_20, %c0_21] : memref<8x128xf32, #tpu.memory_space<vmem>>, vector<8x128xf32>
    tpu.vector_store %arg8[%c0_20, %c0_21], %34 {strides = array<i32>} : memref<8x128xf32, #tpu.memory_space<vmem>>, vector<8x128xf32>,
    return
  }
  func.func @transform_0(%arg0: i32) -> (i32, i32) {
    %c0_i32 = arith.constant 0 : i32
    %c0_i32_0 = arith.constant 0 : i32
    return %arg0, %c0_i32 : i32, i32
  }
  func.func @transform_1(%arg0: i32) -> (i32, i32) {
    %c0_i32 = arith.constant 0 : i32
    %c0_i32_0 = arith.constant 0 : i32
    %c0_i32_1 = arith.constant 0 : i32
    return %c0_i32, %c0_i32_0 : i32, i32
  }
  func.func @transform_2(%arg0: i32) -> (i32, i32) {
    %c0_i32 = arith.constant 0 : i32
    %c0_i32_0 = arith.constant 0 : i32
    %c0_i32_1 = arith.constant 0 : i32
    return %c0_i32, %c0_i32_0 : i32, i32
  }
  func.func @transform_3(%arg0: i32) -> (i32, i32) {
    %c0_i32 = arith.constant 0 : i32
    %c0_i32_0 = arith.constant 0 : i32
    %c0_i32_1 = arith.constant 0 : i32
    return %c0_i32, %c0_i32_0 : i32, i32
  }
  func.func @transform_4(%arg0: i32) -> (i32, i32) {
    %c0_i32 = arith.constant 0 : i32
    %c0_i32_0 = arith.constant 0 : i32
    %c0_i32_1 = arith.constant 0 : i32
    return %c0_i32, %c0_i32_0 : i32, i32
  }
  func.func @transform_5(%arg0: i32) -> (i32, i32) {
    %c0_i32 = arith.constant 0 : i32
    %c0_i32_0 = arith.constant 0 : i32
    %c0_i32_1 = arith.constant 0 : i32
    return %c0_i32, %c0_i32_0 : i32, i32
  }
  func.func @transform_6(%arg0: i32) -> (i32, i32) {
    %c0_i32 = arith.constant 0 : i32
    %c0_i32_0 = arith.constant 0 : i32
    %c0_i32_1 = arith.constant 0 : i32
    return %c0_i32, %c0_i32_0 : i32, i32
  }
  func.func @transform_7(%arg0: i32) -> (i32, i32) {
    %c0_i32 = arith.constant 0 : i32
    %c0_i32_0 = arith.constant 0 : i32
    return %arg0, %c0_i32 : i32, i32
  }
}

</mosaic_0001>

<bundles_post_ra>
// kernel: actor_forward.1
= control target key start
LH: loop header
LB: loop body
LE: loop exit
PB: predicated region body
PF: predicated region fallthrough
CT: control target
= control target key end

     0   :  { %vm51_vm0 = vcmask 261120   ;;  %vm80_vm1 = vcmask 523264   ;;  %v132_v38 = vlaneseq  ;;  %s285_s1 = inlined_call_operand.vmem [shape: f32[32,64], index: 1, kind: input, shape index: {}]   ;;  %s286_s3 = inlined_call_operand.vmem [shape: f32[64,64], index: 3, kind: input, shape index: {}]   ;;  %s287_s0 = inlined_call_operand.vmem [shape: f32[8,32], index: 0, kind: input, shape index: {}]   ;;  %s288_s2 = inlined_call_operand.vmem [shape: f32[1,64], index: 2, kind: input, shape index: {}]   ;;  %s289_s4 = inlined_call_operand.vmem [shape: f32[1,64], index: 4, kind: input, shape index: {}]   ;;  %s290_s5 = inlined_call_operand.vmem [shape: f32[64,128], index: 5, kind: input, shape index: {}]   ;;  %s291_s6 = inlined_call_operand.vmem [shape: f32[1,128], index: 6, kind: input, shape index: {}]   ;;  %s292_s7 = inlined_call_operand.vmem [shape: f32[8,128], index: 7, kind: output, shape index: {}]  }
   0x1   :  { %v29_v0 = vld [vmem:[%s285_s1 + $0x18] sm:$0xff]  ;;  %v28_v1 = vld [vmem:[%s285_s1 + $0x10] sm:$0xff]  ;;  %v27_v3 = vld [vmem:[%s285_s1 + $0x8] sm:$0xff] }
   0x2   :  { %67 = vmatpush.msra.mxu0 %v29_v0  ;;  %v37_v2 = vld [vmem:[%s286_s3 + $0x38] sm:$0xff]  ;;  %v36_v4 = vld [vmem:[%s286_s3 + $0x30] sm:$0xff]  ;;  %v35_v5 = vld [vmem:[%s286_s3 + $0x28] sm:$0xff]  ;;  %v133_v42 = vand.u32 127, %v132_v38 }
   0x3   :  { %92 = vmatpush.msra.mxu1 %v37_v2  ;;  %v26_v6 = vld [vmem:[%s285_s1] sm:$0xff]  ;;  %v33_v9 = vld [vmem:[%s286_s3 + $0x18] sm:$0xff]  ;;  %v32_v10 = vld [vmem:[%s286_s3 + $0x10] sm:$0xff] }
   0x4   :  { %68 = vmatpush.msra.mxu0 %v28_v1  ;;  %v46_v7 = vld [vmem:[%s287_s0] sm:$0xff]  ;;  %v31_v11 = vld [vmem:[%s286_s3 + $0x8] sm:$0xff]  ;;  %v45_v13 = vld [vmem:[%s290_s5 + $0x38] sm:$0xff]  ;;  %vm151_vm3 = vcmp.lt.s32.totalorder %v133_v42, 4 }
   0x5   :  { %93 = vmatpush.msra.mxu1 %v36_v4  ;;  %v34_v8 = vld [vmem:[%s286_s3 + $0x20] sm:$0xff]  ;;  %v44_v14 = vld [vmem:[%s290_s5 + $0x30] sm:$0xff]  ;;  %120 = vmatpush.msra.mxu2 %v45_v13  ;;  %v43_v15 = vld [vmem:[%s290_s5 + $0x28] sm:$0xff] }
   0x6   :  { %69 = vmatpush.msra.mxu0 %v27_v3  ;;  %v30_v12 = vld [vmem:[%s286_s3] sm:$0xff]  ;;  %v41_v17 = vld [vmem:[%s290_s5 + $0x18] sm:$0xff]  ;;  %v40_v22 = vld [vmem:[%s290_s5 + $0x10] sm:$0xff] }
   0x7   :  { %94 = vmatpush.msra.mxu1 %v35_v5  ;;  %121 = vmatpush.msra.mxu2 %v44_v14  ;;  %v42_v16 = vld [vmem:[%s290_s5 + $0x20] sm:$0xff]  ;;  %v39_v23 = vld [vmem:[%s290_s5 + $0x8] sm:$0xff] }
   0x8   :  { %70 = vmatpush.msra.mxu0 %v26_v6  ;;  %v161_v18 = vld [vmem:[%s288_s2] ss:$0 sm:$0xff] }
   0x9   :  { %158 = vmatmul.msk.f32.vlgmr.msra.gmra.mxu0 %vm51_vm0, %v46_v7  ;;  %95 = vmatpush.msra.mxu1 %v34_v8  ;;  %v38_v24 = vld [vmem:[%s290_s5] sm:$0xff] }
   0xa   :  { %122 = vmatpush.msra.mxu2 %v43_v15  ;;  %v162_v25 = vld [vmem:[%s289_s4] ss:$0 sm:$0xff] }
   0xb   :  { %96 = vmatpush.msra.mxu1 %v33_v9  ;;  %v163_v29 = vld [vmem:[%s291_s6] ss:$0 sm:$0xff] }
   0xc   :  { %123 = vmatpush.msra.mxu2 %v42_v16 }
   0xd   :  { %97 = vmatpush.msra.mxu1 %v32_v10 }
   0xe   :  { %124 = vmatpush.msra.mxu2 %v41_v17 }
   0xf   :  { %98 = vmatpush.msra.mxu1 %v31_v11 }
  0x10   :  { %125 = vmatpush.msra.mxu2 %v40_v22 }
  0x11   :  { %99 = vmatpush.msra.mxu1 %v30_v12 }
  0x12   :  { %126 = vmatpush.msra.mxu2 %v39_v23 }
  0x14   :  { %127 = vmatpush.msra.mxu2 %v38_v24 }
  0x86   :  { %v72_v19 = vpop.f32.mrf.mxu0 }
  0x87   :  { %v73_v20 = vadd.f32 %v161_v18, %v72_v19 }
  0x89   :  { %v75_v21 = vmax.f32 %v73_v20, 0.0 }
  0x8b   :  { %159 = vmatmul.msk.f32.vlgmr.msra.gmra.mxu1 %vm80_vm1, %v75_v21 }
 0x108   :  { %v101_v26 = vpop.f32.mrf.mxu1 }
 0x109   :  { %v102_v27 = vadd.f32 %v162_v25, %v101_v26 }
 0x10b   :  { %v104_v28 = vmax.f32 %v102_v27, 0.0 }
 0x10d   :  { %160 = vmatmul.msk.f32.vlgmr.msra.gmra.mxu2 %vm80_vm1, %v104_v28 }
 0x190   :  { %v129_v30 = vpop.f32.mrf.mxu2 }
 0x191   :  { %v130_v31 = vadd.f32 %v163_v29, %v129_v30 }
 0x193   :  { %v136_v32 = vand.u32 2147483647, %v130_v31  ;;  %v135_v45 = vmax.f32 %v130_v31, 0.0 }
 0x195   :  { %v137_v33 = vsub.f32 0.0, %v136_v32 }
 0x197   :  { %v138_v34 = vmul.f32 1.442695, %v137_v33 }
 0x199   :  { %164 = vpow2.f32 %v138_v34 }
 0x19f   :  { %v165_v35 = vpop.eup %164 }
 0x1a0   :  { %v140_v36 = vadd.f32 1.0, %v165_v35  ;;  %v143_v37 = vmul.f32 -0.5, %v165_v35  ;;  %v146_v40 = vand.u32 2147483647, %v165_v35 }
 0x1a2   :  { %166 = vlog2.f32 %v140_v36  ;;  %v144_v39 = vadd.f32 1.0, %v143_v37  ;;  %vm147_vm2 = vcmp.lt.f32.partialorder %v146_v40, 0.0004427343 }
 0x1a3   :  { %168 = vtanh.f32 %v130_v31 }
 0x1a4   :  { %v145_v44 = vmul.f32 %v165_v35, %v144_v39 }
 0x1a8   :  { %v167_v41 = vpop.eup %166 }
 0x1a9   :  { %v142_v43 = vmul.f32 0.6931472, %v167_v41  ;;  %v169_v49 = vpop.eup %168 }
 0x1ab   :  { %v148_v46 = vsel %vm147_vm2, %v145_v44, %v142_v43 }
 0x1ac   :  { %v149_v47 = vadd.f32 %v148_v46, %v135_v45 }
 0x1ae   :  { %v150_v48 = vadd.f32 0.0001, %v149_v47 }
 0x1b0   :  { %v152_v50 = vsel %vm151_vm3, %v169_v49, %v150_v48 }
 0x1b1   :  { %153 = vst [vmem:[%s292_s7] sm:$0xff] %v152_v50 }

</bundles_post_ra>
